<compile_context>
chip_gen: v6e
topology: v6e:2x2x1
jax: 0.10.0
libtpu: 0.0.40
codegen_flags: <defaults>
</compile_context>

<pallas_src>
import jax
import jax.numpy as jnp
from jax.experimental import pallas as pl
from jax.experimental.pallas import tpu as pltpu

# Synthetic hyper-parameters implied by the module's __init__.
MAX_LENGTH = 32      # input feature size ("max_length")
HIDDEN = 128         # fixed hidden width in the module
NUM_CLS = 8          # "cls_num"
BATCH = 8            # small example batch


def _round_up(n, m):
    return ((n + m - 1) // m) * m


def _mlp_kernel(x_ref, w1_ref, b1_ref, w2_ref, b2_ref, o_ref):
    # First linear (bf16 operands, f32 MXU accumulation) + bias + ReLU in f32.
    h = jnp.dot(x_ref[...], w1_ref[...], preferred_element_type=jnp.float32)
    h = jnp.maximum(h + b1_ref[...], 0.0)          # b1 is (1, H) f32, broadcasts over rows
    # Dropout(p=0.2): identity in eval/inference mode (see TODO at top of file).
    # Second linear: N = num_cls (8) -> single MXU pass; narrow (masked) store is
    # far cheaper than 16x the HBM writeback of a 128-wide padded output.
    out = jnp.dot(h.astype(w2_ref.dtype), w2_ref[...],
                  preferred_element_type=jnp.float32)
    o_ref[...] = (out + b2_ref[...]).astype(o_ref.dtype)


def nnv1_forward(x, w1, b1, w2, b2, *, block_rows=1024):
    """x: [B, MAX_LENGTH] f32 -> [B, NUM_CLS] f32 (fused MLP head)."""
    B, D = x.shape
    H = w1.shape[1]
    C = w2.shape[1]

    # --- Halve DMA bytes / speed up MXU: bf16 operands, f32 accumulation ---
    x_lo = x.astype(jnp.bfloat16)
    w1_lo = w1.astype(jnp.bfloat16)
    w2_lo = w2.astype(jnp.bfloat16)

    # --- Row tiling ---------------------------------------------------------
    # Single step when the batch fits in one tile (pad <= 7 rows).  Otherwise
    # pick an even number of steps so the "parallel" batch axis splits evenly
    # across v7x's two TensorCores, with tile size capped near block_rows so the
    # padding waste stays ~1/G of the batch instead of up to ~2x.
    BP8 = _round_up(B, 8)
    if BP8 <= block_rows:
        TM = BP8
    else:
        G = pl.cdiv(BP8, block_rows)
        if G % 2:
            G += 1
        TM = _round_up(pl.cdiv(BP8, G), 8)
    BP = _round_up(B, TM)
    if BP != B:
        x_lo = jnp.pad(x_lo, ((0, BP - B), (0, 0)))
    grid = (BP // TM,)

    flops = 2 * BP * D * H + 2 * BP * H * C
    bytes_accessed = (2 * (BP * D + D * H + H * C)      # bf16: x, W1, W2
                      + 4 * (H + C + BP * C))           # f32: b1, b2, output

    out = pl.pallas_call(
        _mlp_kernel,
        out_shape=jax.ShapeDtypeStruct((BP, C), jnp.float32),
        grid=grid,
        in_specs=[
            pl.BlockSpec((TM, D), lambda i: (i, 0)),    # x tile (pipelined per step)
            pl.BlockSpec((D, H), lambda i: (0, 0)),     # W1 (fetched once, VMEM-resident)
            pl.BlockSpec((1, H), lambda i: (0, 0)),     # b1 (f32)
            pl.BlockSpec((H, C), lambda i: (0, 0)),     # W2 (true N = num_cls)
            pl.BlockSpec((1, C), lambda i: (0, 0)),     # b2 (f32)
        ],
        out_specs=pl.BlockSpec((TM, C), lambda i: (i, 0)),   # narrow, un-padded columns
        compiler_params=pltpu.CompilerParams(
            dimension_semantics=("parallel",)),          # batch axis -> both TCs on v7x
        cost_estimate=pl.CostEstimate(
            flops=flops, transcendentals=0, bytes_accessed=bytes_accessed),
    )(x_lo, w1_lo, b1, w2_lo, b2)

    # Strip batch padding only (no column padding anymore).
    return out[:B] if BP != B else out


def init_params(key):
    """Deterministic PyTorch-style (kaiming-uniform-ish) init for the two Linears."""
    k1, k2, k3, k4 = jax.random.split(key, 4)
    bound1 = 1.0 / jnp.sqrt(MAX_LENGTH)
    bound2 = 1.0 / jnp.sqrt(HIDDEN)
    # stored as [D_in, D_out] (transposed vs. nn.Linear.weight)
    w1 = jax.random.uniform(k1, (MAX_LENGTH, HIDDEN), jnp.float32, -bound1, bound1)
    b1 = jax.random.uniform(k2, (1, HIDDEN), jnp.float32, -bound1, bound1)
    w2 = jax.random.uniform(k3, (HIDDEN, NUM_CLS), jnp.float32, -bound2, bound2)
    b2 = jax.random.uniform(k4, (1, NUM_CLS), jnp.float32, -bound2, bound2)
    return w1, b1, w2, b2


def reference_forward_f32(x, w1, b1, w2, b2):
    """Full-precision reference (module semantics in eval mode)."""
    h = jnp.maximum(x @ w1 + b1, 0.0)
    return h @ w2 + b2


def reference_forward_bf16(x, w1, b1, w2, b2):
    """Reference with the kernel's quantization (bf16 operands, f32 accumulation)."""
    xb = x.astype(jnp.bfloat16)
    w1b = w1.astype(jnp.bfloat16)
    w2b = w2.astype(jnp.bfloat16)
    h = jnp.maximum(jnp.dot(xb, w1b, preferred_element_type=jnp.float32) + b1, 0.0)
    return jnp.dot(h.astype(jnp.bfloat16), w2b, preferred_element_type=jnp.float32) + b2


if __name__ == "__main__":
    key = jax.random.PRNGKey(0)
    kx, kb, kp = jax.random.split(key, 3)
    w1, b1, w2, b2 = init_params(kp)

    # Module-scale batch (single grid step, TM = 8).
    x_small = jax.random.normal(kx, (BATCH, MAX_LENGTH), jnp.float32)
    out_small = jax.block_until_ready(nnv1_forward(x_small, w1, b1, w2, b2))
    assert out_small.shape == (BATCH, NUM_CLS)
    assert out_small.dtype == jnp.float32
    assert jnp.allclose(out_small, reference_forward_bf16(x_small, w1, b1, w2, b2),
                        atol=1e-4, rtol=1e-4)
    assert jnp.allclose(out_small, reference_forward_f32(x_small, w1, b1, w2, b2),
                        atol=5e-2, rtol=5e-2)

    # Larger batch exercising the multi-step tiled grid (2 steps of TM=768 rows,
    # even split across v7x's two TensorCores), weights VMEM-resident across steps.
    x_big = jax.random.normal(kb, (1536, MAX_LENGTH), jnp.float32)
    out_big = jax.block_until_ready(nnv1_forward(x_big, w1, b1, w2, b2))
    assert out_big.shape == (1536, NUM_CLS)
    assert jnp.allclose(out_big, reference_forward_bf16(x_big, w1, b1, w2, b2),
                        atol=1e-4, rtol=1e-4)
    assert jnp.allclose(out_big, reference_forward_f32(x_big, w1, b1, w2, b2),
                        atol=5e-2, rtol=5e-2)

    # Awkward batch size (not a tile multiple) to exercise bounded row padding.
    x_odd = jax.random.normal(kb, (1100, MAX_LENGTH), jnp.float32)
    out_odd = jax.block_until_ready(nnv1_forward(x_odd, w1, b1, w2, b2))
    assert out_odd.shape == (1100, NUM_CLS)
    assert jnp.allclose(out_odd, reference_forward_bf16(x_odd, w1, b1, w2, b2),
                        atol=1e-4, rtol=1e-4)

    print("KERNEL_OK")
</pallas_src>

<mosaic_0001>
module attributes {stable_mosaic.version = 11 : i64} {
  func.func @_mlp_kernel(%arg0: i32, %arg1: memref<8x32xbf16, #tpu.memory_space<vmem>>, %arg2: memref<32x128xbf16, #tpu.memory_space<vmem>>, %arg3: memref<1x128xf32, #tpu.memory_space<vmem>>, %arg4: memref<128x8xbf16, #tpu.memory_space<vmem>>, %arg5: memref<1x8xf32, #tpu.memory_space<vmem>>, %arg6: memref<8x8xf32, #tpu.memory_space<vmem>>) attributes {dimension_semantics = [#tpu.dimension_semantics<parallel>], iteration_bounds = array<i64: 1>, scalar_prefetch = 0 : i64, scratch_operands = 0 : i64, tpu.core_type = #tpu.core_type<tc>, window_params = [{transform_indices = @transform_0, window_bounds = array<i64: 8, 32>}, {pipeline_mode = #tpu.pipeline_mode<synchronous>, transform_indices = @transform_1, window_bounds = array<i64: 32, 128>}, {pipeline_mode = #tpu.pipeline_mode<synchronous>, transform_indices = @transform_2, window_bounds = array<i64: 1, 128>}, {pipeline_mode = #tpu.pipeline_mode<synchronous>, transform_indices = @transform_3, window_bounds = array<i64: 128, 8>}, {pipeline_mode = #tpu.pipeline_mode<synchronous>, transform_indices = @transform_4, window_bounds = array<i64: 1, 8>}, {transform_indices = @transform_5, window_bounds = array<i64: 8, 8>}]} {
    %c0 = arith.constant 0 : index
    %c0_0 = arith.constant 0 : index
    %0 = vector.load %arg1[%c0, %c0_0] : memref<8x32xbf16, #tpu.memory_space<vmem>>, vector<8x32xbf16>
    %c0_1 = arith.constant 0 : index
    %c0_2 = arith.constant 0 : index
    %1 = vector.load %arg2[%c0_1, %c0_2] : memref<32x128xbf16, #tpu.memory_space<vmem>>, vector<32x128xbf16>
    %cst = arith.constant dense<0.000000e+00> : vector<8x128xf32>
    %2 = tpu.matmul %0, %1, %cst {dimension_numbers = #tpu.dot_dimension_numbers<[1], [0], [0], [1], [0, 0, 1, 1], [], []>} : vector<8x32xbf16>, vector<32x128xbf16>, vector<8x128xf32> -> vector<8x128xf32>
    %c0_3 = arith.constant 0 : index
    %c0_4 = arith.constant 0 : index
    %3 = vector.load %arg3[%c0_3, %c0_4] : memref<1x128xf32, #tpu.memory_space<vmem>>, vector<1x128xf32>
    %4 = vector.broadcast %3 : vector<1x128xf32> to vector<8x128xf32>
    %5 = arith.addf %2, %4 : vector<8x128xf32>
    %cst_5 = arith.constant 0.000000e+00 : f32
    %6 = vector.broadcast %cst_5 : f32 to vector<8x128xf32>
    %7 = arith.maximumf %5, %6 : vector<8x128xf32>
    %8 = arith.truncf %7 : vector<8x128xf32> to vector<8x128xbf16>
    %c0_6 = arith.constant 0 : index
    %c0_7 = arith.constant 0 : index
    %9 = vector.load %arg4[%c0_6, %c0_7] : memref<128x8xbf16, #tpu.memory_space<vmem>>, vector<128x8xbf16>
    %cst_8 = arith.constant dense<0.000000e+00> : vector<8x8xf32>
    %10 = tpu.matmul %8, %9, %cst_8 {dimension_numbers = #tpu.dot_dimension_numbers<[1], [0], [0], [1], [0, 0, 1, 1], [], []>} : vector<8x128xbf16>, vector<128x8xbf16>, vector<8x8xf32> -> vector<8x8xf32>
    %c0_9 = arith.constant 0 : index
    %c0_10 = arith.constant 0 : index
    %11 = vector.load %arg5[%c0_9, %c0_10] : memref<1x8xf32, #tpu.memory_space<vmem>>, vector<1x8xf32>
    %12 = vector.broadcast %11 : vector<1x8xf32> to vector<8x8xf32>
    %13 = arith.addf %10, %12 : vector<8x8xf32>
    %c0_11 = arith.constant 0 : index
    %c0_12 = arith.constant 0 : index
    %14 = vector.load %arg6[%c0_11, %c0_12] : memref<8x8xf32, #tpu.memory_space<vmem>>, vector<8x8xf32>
    tpu.vector_store %arg6[%c0_11, %c0_12], %13 {strides = array<i32>} : memref<8x8xf32, #tpu.memory_space<vmem>>, vector<8x8xf32>,
    return
  }
  func.func @transform_0(%arg0: i32) -> (i32, i32) {
    %c0_i32 = arith.constant 0 : i32
    %c0_i32_0 = arith.constant 0 : i32
    return %arg0, %c0_i32 : i32, i32
  }
  func.func @transform_1(%arg0: i32) -> (i32, i32) {
    %c0_i32 = arith.constant 0 : i32
    %c0_i32_0 = arith.constant 0 : i32
    %c0_i32_1 = arith.constant 0 : i32
    return %c0_i32, %c0_i32_0 : i32, i32
  }
  func.func @transform_2(%arg0: i32) -> (i32, i32) {
    %c0_i32 = arith.constant 0 : i32
    %c0_i32_0 = arith.constant 0 : i32
    %c0_i32_1 = arith.constant 0 : i32
    return %c0_i32, %c0_i32_0 : i32, i32
  }
  func.func @transform_3(%arg0: i32) -> (i32, i32) {
    %c0_i32 = arith.constant 0 : i32
    %c0_i32_0 = arith.constant 0 : i32
    %c0_i32_1 = arith.constant 0 : i32
    return %c0_i32, %c0_i32_0 : i32, i32
  }
  func.func @transform_4(%arg0: i32) -> (i32, i32) {
    %c0_i32 = arith.constant 0 : i32
    %c0_i32_0 = arith.constant 0 : i32
    %c0_i32_1 = arith.constant 0 : i32
    return %c0_i32, %c0_i32_0 : i32, i32
  }
  func.func @transform_5(%arg0: i32) -> (i32, i32) {
    %c0_i32 = arith.constant 0 : i32
    %c0_i32_0 = arith.constant 0 : i32
    return %arg0, %c0_i32 : i32, i32
  }
}

</mosaic_0001>

<bundles_post_ra>
// kernel: tpu_custom_call.1
= control target key start
LH: loop header
LB: loop body
LE: loop exit
PB: predicated region body
PF: predicated region fallthrough
CT: control target
= control target key end

     0   :  { %v307_v1 = vmov 0.0   ;;  %vm308_vm0 = vmmov 0   ;;  %vm46_vm1 = vcmask 261120   ;;  %s382_s0 = inlined_call_operand.vmem [shape: bf16[8,32], index: 0, kind: input, shape index: {}]   ;;  %s383_s1 = inlined_call_operand.vmem [shape: bf16[32,128], index: 1, kind: input, shape index: {}]   ;;  %s384_s2 = inlined_call_operand.vmem [shape: f32[1,128], index: 2, kind: input, shape index: {}]   ;;  %s385_s3 = inlined_call_operand.vmem [shape: bf16[128,8], index: 3, kind: input, shape index: {}]   ;;  %s386_s4 = inlined_call_operand.vmem [shape: f32[1,8], index: 4, kind: input, shape index: {}]   ;;  %s387_s5 = inlined_call_operand.hbm [shape: f32[8,8], index: 5, kind: output, shape index: {}]  }
   0x1   :  { %v275_v0 = vld [vmem:[%s383_s1 + $0x8] sm:$0xff]   ;;  %244 = vmatprep.subr.bf16.mxu0 %v307_v1  ;;  %252 = vmatprep.subr.bf16.mxu1 %v307_v1  ;;  %v276_v2 = vld [vmem:[%s383_s1] sm:$0xff]   ;;  %v277_v3 = vld [vmem:[%s385_s3 + $0x38] sm:$0xff]  }
   0x2   :  { %245 = vmatpush3.bf16.msra.mxu0 %v275_v0  ;;  %248 = vmatprep.mubr.msk.bf16.mxu0 %vm308_vm0, %v307_v1  ;;  %v278_v4 = vld [vmem:[%s385_s3 + $0x30] sm:$0xff]   ;;  %v22_v5 = vld [vmem:[%s382_s0] sm:$0xf]  ;;  %v279_v6 = vld [vmem:[%s385_s3 + $0x28] sm:$0xff]  }
   0x3   :  { %246 = vmatprep.subr.bf16.mxu0 %v307_v1  ;;  %268 = vmatprep.mubr.msk.bf16.mxu1 %vm308_vm0, %v307_v1 }
   0x4   :  { %253 = vmatpush3.bf16.msra.mxu1 %v277_v3 }
   0x5   :  { %254 = vmatprep.subr.bf16.mxu1 %v307_v1 }
   0x6   :  { %247 = vmatpush3.bf16.msra.mxu0 %v276_v2 }
   0x8   :  { %255 = vmatpush3.bf16.msra.mxu1 %v278_v4 }
   0x9   :  { %249 = vmatmul.mubr.msk.bf16.vlgmr.msra.gmra.mxu0 %vm46_vm1, %v22_v5  ;;  %256 = vmatprep.subr.bf16.mxu1 %v307_v1 }
   0xa   :  { %10 = vsyncpa [#allocation3], 0  ;;  %v280_v7 = vld [vmem:[%s385_s3 + $0x20] sm:$0xff]   ;;  %v281_v8 = vld [vmem:[%s385_s3 + $0x18] sm:$0xff]   ;;  %s309_s17 = smov [#allocation2]   ;;  %vm203_vm2 = vcmask 64512  }
   0xb   :  { %v282_v9 = vld [vmem:[%s385_s3 + $0x10] sm:$0xff]   ;;  %v283_v10 = vld [vmem:[%s385_s3 + $0x8] sm:$0xff]   ;;  %v284_v11 = vld [vmem:[%s385_s3] sm:$0xff]   ;;  %s211_s18 = sshll.u32 %s309_s17, 4  ;;  %s212_s18 = int_to_ptr.vmem [resolvable:$true] %s211_s18 }
   0xc   :  { %257 = vmatpush3.bf16.msra.mxu1 %v279_v6  ;;  %v219_v12 = vld [vmem:[%s384_s2] ss:$0 sm:$0xff]  ;;  %s285_s2 = scalar_lea.vmem %s212_s18, 128  ;;  %p290_p1 = scmp.lt.s32.totalorder %s212_s18, %s212_s18 }
   0xd   :  { %258 = vmatprep.subr.bf16.mxu1 %v307_v1  ;;  %v223_v20 = vld [vmem:[%s386_s4] ss:$0 sm:$0xff]  ;;  %p286_p0 = scmp.ne.s32.totalorder %s212_s18, %s285_s2  ;;  %p291_p2 = scmp.lt.s32.totalorder %s285_s2, %s285_s2 }
   0xf   :  { %p292_p3 = por %p291_p2, %p290_p1 }
  0x10   :  { %259 = vmatpush3.bf16.msra.mxu1 %v280_v7 }
  0x11   :  { %260 = vmatprep.subr.bf16.mxu1 %v307_v1  ;;  %p293_p4 = pnand %p292_p3, %p286_p0 }
  0x14   :  { %261 = vmatpush3.bf16.msra.mxu1 %v281_v8 }
  0x15   :  { %262 = vmatprep.subr.bf16.mxu1 %v307_v1 }
  0x18   :  { %263 = vmatpush3.bf16.msra.mxu1 %v282_v9 }
  0x19   :  { %264 = vmatprep.subr.bf16.mxu1 %v307_v1 }
  0x1c   :  { %265 = vmatpush3.bf16.msra.mxu1 %v283_v10 }
  0x1d   :  { %266 = vmatprep.subr.bf16.mxu1 %v307_v1 }
  0x20   :  { %267 = vmatpush3.bf16.msra.mxu1 %v284_v11 }
  0xc9   :  { %v84_v13 = vpop.f32.mrf.mxu0 }
  0xca   :  { %v85_v14 = vadd.f32 %v219_v12, %v84_v13 }
  0xcb   :  { %v250_v15 = vpop.f32.mrf.mxu0 }
  0xcc   :  { %v90_v16 = vmax.f32 %v85_v14, 0.0 }
  0xcd   :  { %v87_v17 = vpop.f32.mrf.mxu0 }
  0xce   :  { %v91_v18 = vpack.c.bf16 %v90_v16, %v90_v16 }
  0xcf   :  { %v251_v19 = vpop.f32.mrf.mxu0 }
  0xd0   :  { %269 = vmatmul.mubr.bf16.vlgmr.msra.gmra.mxu1 %v91_v18 }
 0x190   :  { %v197_v21 = vpop.f32.mrf.mxu1 }
 0x191   :  { %v198_v22 = vadd.f32 %v223_v20, %v197_v21 }
 0x192   :  { %v270_v23 = vpop.f32.mrf.mxu1 }
 0x193   :  { %204 = vst.msk [vmem:[#allocation2] sm:$0xff] %vm203_vm2, %v198_v22 }
 0x194   :  { %v200_v24 = vpop.f32.mrf.mxu1 }
 0x195   :  { %296 = shalt.err (!%p293_p4)
}
 0x196   :  { %214 = dma.vmem_to_hbm [thread:$0]  %s212_s18, 128, %s387_s5, [#allocation3]   ;;  %v271_v25 = vpop.f32.mrf.mxu1 }
 0x197   :  { %305 = dma.done.wait [#allocation3], 128  }
 0x198   :  { %306 = vsyncadd [#allocation3], 4294967168 }
 0x199   :  { %218 = vsyncpa [#allocation3], 1 }

</bundles_post_ra>
